<compile_context>
chip_gen: v6e
topology: v6e:2x2x1
jax: 0.10.0
libtpu: 0.0.40
codegen_flags: <defaults>
</compile_context>

<pallas_src>
import functools

import jax
import jax.numpy as jnp
import numpy as np
from jax import lax
from jax.experimental import pallas as pl
from jax.experimental.pallas import tpu as pltpu

K = 3      # conv kernel size
PAD = 128  # zero border (flattened-spatial lanes) each side; >= W+1 and 128-aligned


def resblock_kernel(x_ref, w1_ref, b1_ref, w2_ref, b2_ref, o_ref, pad_ref, *, H, W):
    # x_ref:   (1, R, H*W)        R = G*C packed (batch-group, channel) rows
    # w1_ref:  (K*K, R, R)        block-diagonal per-tap weights, tap t = dy*K + dx
    # b1_ref:  (R, 1)
    # w2_ref:  (K*K, R, R)
    # b2_ref:  (R, 1)
    # o_ref:   (1, R, H*W)
    # pad_ref: (R, PAD + H*W + PAD) f32 scratch; zero borders emulate SAME padding
    R = x_ref.shape[1]
    HW = H * W
    f32 = jnp.float32

    # Column-validity masks for horizontal taps (dx=0 reads x-1, dx=2 reads x+1).
    # The flat-shifted read wraps into the adjacent image row there; zero those lanes.
    col = lax.broadcasted_iota(jnp.int32, (1, HW), 1) % W
    ok_left = col != 0          # x-1 >= 0
    ok_right = col != (W - 1)   # x+1 <  W

    # Zero only the borders (interior is fully rewritten below). Done every grid
    # step so the kernel stays correct if the batch axis is split across cores.
    zeros_border = jnp.zeros((R, PAD), f32)
    pad_ref[:, :PAD] = zeros_border
    pad_ref[:, PAD + HW:] = zeros_border

    x = x_ref[0].astype(f32)    # (R, HW): conv1 input and identity residual

    def conv3x3(w_ref, b_ref):
        # Accumulate one (R, R) x (R, HW) MXU matmul per 3x3 tap.
        acc = jnp.zeros((R, HW), f32)
        for dy in range(K):
            for dx in range(K):
                off = (dy - 1) * W + (dx - 1)
                patch = pad_ref[:, PAD + off:PAD + off + HW]      # (R, HW)
                if dx == 0:
                    patch = jnp.where(ok_left, patch, 0.0)
                elif dx == 2:
                    patch = jnp.where(ok_right, patch, 0.0)
                acc = acc + jnp.dot(w_ref[dy * K + dx], patch,
                                    preferred_element_type=f32)
        return acc + b_ref[...]                                   # (R,1) bias broadcast

    # conv1 + bias + ReLU
    pad_ref[:, PAD:PAD + HW] = x
    h = jnp.maximum(conv3x3(w1_ref, b1_ref), 0.0)

    # conv2 + bias + identity residual + ReLU (reuse the same scratch)
    pad_ref[:, PAD:PAD + HW] = h
    y = conv3x3(w2_ref, b2_ref) + x
    o_ref[0] = jnp.maximum(y, 0.0).astype(o_ref.dtype)


def _pick_group(N, C, max_rows=128):
    """Largest batch-group G dividing N so G*C rows stay MXU-friendly and the
    BlockSpec sublane dim is either 8-aligned or covers the whole (single) block."""
    best = 1
    for g in range(1, min(N, max(1, max_rows // C)) + 1):
        if N % g == 0 and (g == N or (g * C) % 8 == 0):
            best = g
    return best


def residual_block_pallas(x_nchw, w1_hwio, b1, w2_hwio, b2):
    N, Cin, H, W = x_nchw.shape
    Cout = w2_hwio.shape[-1]
    assert Cout == Cin, "identity shortcut path requires Cout == Cin (stride=1)"
    assert PAD >= W + 1
    HW = H * W

    G = _pick_group(N, Cin)     # batch items packed per grid step
    NB = N // G
    R = G * Cin                 # packed sublane rows per block

    # (N, C, H, W) -> (NB, G*C, H*W): row index inside a block is g*C + c.
    x_blk = x_nchw.reshape(NB, R, HW)

    # (K, K, Cin, Cout) -> per-tap (Cout, Cin) matrices -> block-diag kron(I_G, W_tap).
    eyeg = jnp.eye(G, dtype=jnp.float32)
    w1_tap = jnp.transpose(w1_hwio, (0, 1, 3, 2)).reshape(K * K, Cin, Cin)
    w2_tap = jnp.transpose(w2_hwio, (0, 1, 3, 2)).reshape(K * K, Cout, Cin)
    w1_bd = jnp.einsum('gh,toc->tgohc', eyeg, w1_tap).reshape(K * K, R, R)
    w2_bd = jnp.einsum('gh,toc->tgohc', eyeg, w2_tap).reshape(K * K, R, R)
    b1_bd = jnp.tile(b1.reshape(Cin), (G,)).reshape(R, 1).astype(jnp.float32)
    b2_bd = jnp.tile(b2.reshape(Cout), (G,)).reshape(R, 1).astype(jnp.float32)

    kernel = functools.partial(resblock_kernel, H=H, W=W)

    out_blk = pl.pallas_call(
        kernel,
        out_shape=jax.ShapeDtypeStruct((NB, R, HW), x_nchw.dtype),
        grid_spec=pltpu.PrefetchScalarGridSpec(
            num_scalar_prefetch=0,
            grid=(NB,),
            in_specs=[
                pl.BlockSpec((1, R, HW), lambda n: (n, 0, 0)),
                pl.BlockSpec((K * K, R, R), lambda n: (0, 0, 0)),
                pl.BlockSpec((R, 1), lambda n: (0, 0)),
                pl.BlockSpec((K * K, R, R), lambda n: (0, 0, 0)),
                pl.BlockSpec((R, 1), lambda n: (0, 0)),
            ],
            out_specs=pl.BlockSpec((1, R, HW), lambda n: (n, 0, 0)),
            scratch_shapes=[pltpu.VMEM((R, HW + 2 * PAD), jnp.float32)],
        ),
        compiler_params=pltpu.CompilerParams(
            dimension_semantics=("parallel",)),
    )(x_blk, w1_bd, b1_bd, w2_bd, b2_bd)

    return out_blk.reshape(N, Cout, H, W)


def residual_block_reference(x_nchw, w1_hwio, b1, w2_hwio, b2):
    dn = lax.conv_dimension_numbers(x_nchw.shape, w1_hwio.shape,
                                    ('NCHW', 'HWIO', 'NCHW'))
    h = lax.conv_general_dilated(x_nchw, w1_hwio, (1, 1), 'SAME',
                                 dimension_numbers=dn) + b1.reshape(1, -1, 1, 1)
    h = jnp.maximum(h, 0.0)
    y = lax.conv_general_dilated(h, w2_hwio, (1, 1), 'SAME',
                                 dimension_numbers=dn) + b2.reshape(1, -1, 1, 1)
    return jnp.maximum(y + x_nchw, 0.0)


if __name__ == "__main__":
    # Small shapes consistent with ResidualBlock(input_channels=4) default args.
    N, C, H, W = 2, 4, 16, 16

    key = jax.random.PRNGKey(0)
    kx, kw1, kb1, kw2, kb2 = jax.random.split(key, 5)

    # Input in PyTorch NCHW convention (the kernel works channels-major natively).
    x_nchw = jax.random.normal(kx, (N, C, H, W), dtype=jnp.float32)

    # conv1: xavier_normal  (fan_in = fan_out = C*K*K)
    fan = C * K * K
    xavier_std = float(np.sqrt(2.0 / (fan + fan)))
    w1 = jax.random.normal(kw1, (K, K, C, C), dtype=jnp.float32) * xavier_std
    # conv2: PyTorch default (kaiming-uniform-like) — deterministic uniform here.
    bound = float(1.0 / np.sqrt(fan))
    w2 = jax.random.uniform(kw2, (K, K, C, C), dtype=jnp.float32,
                            minval=-bound, maxval=bound)
    # biases: PyTorch default uniform(-1/sqrt(fan_in), 1/sqrt(fan_in))
    b1 = jax.random.uniform(kb1, (C,), dtype=jnp.float32,
                            minval=-bound, maxval=bound)
    b2 = jax.random.uniform(kb2, (C,), dtype=jnp.float32,
                            minval=-bound, maxval=bound)

    out = residual_block_pallas(x_nchw, w1, b1, w2, b2)
    out = jax.block_until_ready(out)

    ref = residual_block_reference(x_nchw, w1, b1, w2, b2)
    np.testing.assert_allclose(np.asarray(out), np.asarray(ref),
                               rtol=1e-5, atol=1e-5)

    print("KERNEL_OK")
</pallas_src>

<mosaic_0001>
module attributes {stable_mosaic.version = 11 : i64} {
  func.func @resblock_kernel(%arg0: i32, %arg1: memref<1x8x256xf32, #tpu.memory_space<vmem>>, %arg2: memref<9x8x8xf32, #tpu.memory_space<vmem>>, %arg3: memref<8x1xf32, #tpu.memory_space<vmem>>, %arg4: memref<9x8x8xf32, #tpu.memory_space<vmem>>, %arg5: memref<8x1xf32, #tpu.memory_space<vmem>>, %arg6: memref<1x8x256xf32, #tpu.memory_space<vmem>>, %arg7: memref<8x512xf32, #tpu.memory_space<vmem>>) attributes {dimension_semantics = [#tpu.dimension_semantics<parallel>], iteration_bounds = array<i64: 1>, scalar_prefetch = 0 : i64, scratch_operands = 1 : i64, tpu.core_type = #tpu.core_type<tc>, window_params = [{transform_indices = @transform_0, window_bounds = array<i64: 1, 8, 256>}, {pipeline_mode = #tpu.pipeline_mode<synchronous>, transform_indices = @transform_1, window_bounds = array<i64: 9, 8, 8>}, {pipeline_mode = #tpu.pipeline_mode<synchronous>, transform_indices = @transform_2, window_bounds = array<i64: 8, 1>}, {pipeline_mode = #tpu.pipeline_mode<synchronous>, transform_indices = @transform_3, window_bounds = array<i64: 9, 8, 8>}, {pipeline_mode = #tpu.pipeline_mode<synchronous>, transform_indices = @transform_4, window_bounds = array<i64: 8, 1>}, {transform_indices = @transform_5, window_bounds = array<i64: 1, 8, 256>}]} {
    %0 = tpu.iota {dimensions = array<i32: 1>} : vector<1x256xi32>
    %c16_i32 = arith.constant 16 : i32
    %c0_i32 = arith.constant 0 : i32
    %1 = arith.cmpi eq, %c16_i32, %c0_i32 : i32
    %c1_i32 = arith.constant 1 : i32
    %2 = arith.select %1, %c1_i32, %c16_i32 : i32
    %3 = vector.broadcast %2 : i32 to vector<1x256xi32>
    %4 = arith.remsi %0, %3 : vector<1x256xi32>
    %c0_i32_0 = arith.constant 0 : i32
    %5 = vector.broadcast %c0_i32_0 : i32 to vector<1x256xi32>
    %6 = arith.cmpi ne, %4, %5 : vector<1x256xi32>
    %c0_i32_1 = arith.constant 0 : i32
    %7 = vector.broadcast %c0_i32_1 : i32 to vector<1x256xi32>
    %8 = arith.cmpi slt, %4, %7 : vector<1x256xi32>
    %c0_i32_2 = arith.constant 0 : i32
    %9 = arith.cmpi slt, %2, %c0_i32_2 : i32
    %10 = vector.broadcast %9 : i1 to vector<1x256xi1>
    %11 = vector.broadcast %10 : vector<1x256xi1> to vector<1x256xi1>
    %12 = arith.xori %8, %11 : vector<1x256xi1>
    %13 = arith.andi %12, %6 : vector<1x256xi1>
    %14 = vector.broadcast %2 : i32 to vector<1x256xi32>
    %15 = arith.addi %4, %14 : vector<1x256xi32>
    %16 = arith.select %13, %15, %4 : vector<1x256xi1>, vector<1x256xi32>
    %c0_i32_3 = arith.constant 0 : i32
    %17 = vector.broadcast %c0_i32_3 : i32 to vector<1x256xi32>
    %18 = arith.cmpi ne, %16, %17 : vector<1x256xi32>
    %c15_i32 = arith.constant 15 : i32
    %19 = vector.broadcast %c15_i32 : i32 to vector<1x256xi32>
    %20 = arith.cmpi ne, %16, %19 : vector<1x256xi32>
    %cst = arith.constant 0.000000e+00 : f32
    %21 = vector.broadcast %cst : f32 to vector<8x128xf32>
    %c0 = arith.constant 0 : index
    %c0_4 = arith.constant 0 : index
    %22 = vector.load %arg7[%c0, %c0_4] : memref<8x512xf32, #tpu.memory_space<vmem>>, vector<8x128xf32>
    tpu.vector_store %arg7[%c0, %c0_4], %21 {strides = array<i32>} : memref<8x512xf32, #tpu.memory_space<vmem>>, vector<8x128xf32>,
    %c0_5 = arith.constant 0 : index
    %c384 = arith.constant 384 : index
    %23 = vector.load %arg7[%c0_5, %c384] : memref<8x512xf32, #tpu.memory_space<vmem>>, vector<8x128xf32>
    tpu.vector_store %arg7[%c0_5, %c384], %21 {strides = array<i32>} : memref<8x512xf32, #tpu.memory_space<vmem>>, vector<8x128xf32>,
    %c0_6 = arith.constant 0 : index
    %c0_7 = arith.constant 0 : index
    %c0_8 = arith.constant 0 : index
    %24 = vector.load %arg1[%c0_6, %c0_7, %c0_8] : memref<1x8x256xf32, #tpu.memory_space<vmem>>, vector<1x8x256xf32>
    %25 = vector.shape_cast %24 : vector<1x8x256xf32> to vector<8x256xf32>
    %c0_9 = arith.constant 0 : index
    %c128 = arith.constant 128 : index
    %26 = vector.load %arg7[%c0_9, %c128] : memref<8x512xf32, #tpu.memory_space<vmem>>, vector<8x256xf32>
    tpu.vector_store %arg7[%c0_9, %c128], %25 {strides = array<i32>} : memref<8x512xf32, #tpu.memory_space<vmem>>, vector<8x256xf32>,
    %cst_10 = arith.constant 0.000000e+00 : f32
    %27 = vector.broadcast %cst_10 : f32 to vector<8x256xf32>
    %c0_11 = arith.constant 0 : index
    %c111 = arith.constant 111 : index
    %28 = vector.load %arg7[%c0_11, %c111] : memref<8x512xf32, #tpu.memory_space<vmem>>, vector<8x256xf32>
    %cst_12 = arith.constant 0.000000e+00 : f32
    %29 = vector.shape_cast %18 : vector<1x256xi1> to vector<1x256xi1>
    %30 = vector.broadcast %29 : vector<1x256xi1> to vector<8x256xi1>
    %31 = vector.broadcast %cst_12 : f32 to vector<8x256xf32>
    %32 = arith.select %30, %28, %31 : vector<8x256xi1>, vector<8x256xf32>
    %c0_13 = arith.constant 0 : index
    %c0_14 = arith.constant 0 : index
    %c0_15 = arith.constant 0 : index
    %33 = vector.load %arg2[%c0_13, %c0_14, %c0_15] : memref<9x8x8xf32, #tpu.memory_space<vmem>>, vector<1x8x8xf32>
    %34 = vector.shape_cast %33 : vector<1x8x8xf32> to vector<8x8xf32>
    %cst_16 = arith.constant dense<0.000000e+00> : vector<8x256xf32>
    %35 = tpu.matmul %34, %32, %cst_16 {dimension_numbers = #tpu.dot_dimension_numbers<[1], [0], [0], [1], [0, 0, 1, 1], [], []>} : vector<8x8xf32>, vector<8x256xf32>, vector<8x256xf32> -> vector<8x256xf32>
    %36 = arith.addf %27, %35 : vector<8x256xf32>
    %c0_17 = arith.constant 0 : index
    %c112 = arith.constant 112 : index
    %37 = vector.load %arg7[%c0_17, %c112] : memref<8x512xf32, #tpu.memory_space<vmem>>, vector<8x256xf32>
    %c1 = arith.constant 1 : index
    %c0_18 = arith.constant 0 : index
    %c0_19 = arith.constant 0 : index
    %38 = vector.load %arg2[%c1, %c0_18, %c0_19] : memref<9x8x8xf32, #tpu.memory_space<vmem>>, vector<1x8x8xf32>
    %39 = vector.shape_cast %38 : vector<1x8x8xf32> to vector<8x8xf32>
    %cst_20 = arith.constant dense<0.000000e+00> : vector<8x256xf32>
    %40 = tpu.matmul %39, %37, %cst_20 {dimension_numbers = #tpu.dot_dimension_numbers<[1], [0], [0], [1], [0, 0, 1, 1], [], []>} : vector<8x8xf32>, vector<8x256xf32>, vector<8x256xf32> -> vector<8x256xf32>
    %41 = arith.addf %36, %40 : vector<8x256xf32>
    %c0_21 = arith.constant 0 : index
    %c113 = arith.constant 113 : index
    %42 = vector.load %arg7[%c0_21, %c113] : memref<8x512xf32, #tpu.memory_space<vmem>>, vector<8x256xf32>
    %cst_22 = arith.constant 0.000000e+00 : f32
    %43 = vector.shape_cast %20 : vector<1x256xi1> to vector<1x256xi1>
    %44 = vector.broadcast %43 : vector<1x256xi1> to vector<8x256xi1>
    %45 = vector.broadcast %cst_22 : f32 to vector<8x256xf32>
    %46 = arith.select %44, %42, %45 : vector<8x256xi1>, vector<8x256xf32>
    %c2 = arith.constant 2 : index
    %c0_23 = arith.constant 0 : index
    %c0_24 = arith.constant 0 : index
    %47 = vector.load %arg2[%c2, %c0_23, %c0_24] : memref<9x8x8xf32, #tpu.memory_space<vmem>>, vector<1x8x8xf32>
    %48 = vector.shape_cast %47 : vector<1x8x8xf32> to vector<8x8xf32>
    %cst_25 = arith.constant dense<0.000000e+00> : vector<8x256xf32>
    %49 = tpu.matmul %48, %46, %cst_25 {dimension_numbers = #tpu.dot_dimension_numbers<[1], [0], [0], [1], [0, 0, 1, 1], [], []>} : vector<8x8xf32>, vector<8x256xf32>, vector<8x256xf32> -> vector<8x256xf32>
    %50 = arith.addf %41, %49 : vector<8x256xf32>
    %c0_26 = arith.constant 0 : index
    %c127 = arith.constant 127 : index
    %51 = vector.load %arg7[%c0_26, %c127] : memref<8x512xf32, #tpu.memory_space<vmem>>, vector<8x256xf32>
    %cst_27 = arith.constant 0.000000e+00 : f32
    %52 = vector.shape_cast %18 : vector<1x256xi1> to vector<1x256xi1>
    %53 = vector.broadcast %52 : vector<1x256xi1> to vector<8x256xi1>
    %54 = vector.broadcast %cst_27 : f32 to vector<8x256xf32>
    %55 = arith.select %53, %51, %54 : vector<8x256xi1>, vector<8x256xf32>
    %c3 = arith.constant 3 : index
    %c0_28 = arith.constant 0 : index
    %c0_29 = arith.constant 0 : index
    %56 = vector.load %arg2[%c3, %c0_28, %c0_29] : memref<9x8x8xf32, #tpu.memory_space<vmem>>, vector<1x8x8xf32>
    %57 = vector.shape_cast %56 : vector<1x8x8xf32> to vector<8x8xf32>
    %cst_30 = arith.constant dense<0.000000e+00> : vector<8x256xf32>
    %58 = tpu.matmul %57, %55, %cst_30 {dimension_numbers = #tpu.dot_dimension_numbers<[1], [0], [0], [1], [0, 0, 1, 1], [], []>} : vector<8x8xf32>, vector<8x256xf32>, vector<8x256xf32> -> vector<8x256xf32>
    %59 = arith.addf %50, %58 : vector<8x256xf32>
    %c0_31 = arith.constant 0 : index
    %c128_32 = arith.constant 128 : index
    %60 = vector.load %arg7[%c0_31, %c128_32] : memref<8x512xf32, #tpu.memory_space<vmem>>, vector<8x256xf32>
    %c4 = arith.constant 4 : index
    %c0_33 = arith.constant 0 : index
    %c0_34 = arith.constant 0 : index
    %61 = vector.load %arg2[%c4, %c0_33, %c0_34] : memref<9x8x8xf32, #tpu.memory_space<vmem>>, vector<1x8x8xf32>
    %62 = vector.shape_cast %61 : vector<1x8x8xf32> to vector<8x8xf32>
    %cst_35 = arith.constant dense<0.000000e+00> : vector<8x256xf32>
    %63 = tpu.matmul %62, %60, %cst_35 {dimension_numbers = #tpu.dot_dimension_numbers<[1], [0], [0], [1], [0, 0, 1, 1], [], []>} : vector<8x8xf32>, vector<8x256xf32>, vector<8x256xf32> -> vector<8x256xf32>
    %64 = arith.addf %59, %63 : vector<8x256xf32>
    %c0_36 = arith.constant 0 : index
    %c129 = arith.constant 129 : index
    %65 = vector.load %arg7[%c0_36, %c129] : memref<8x512xf32, #tpu.memory_space<vmem>>, vector<8x256xf32>
    %cst_37 = arith.constant 0.000000e+00 : f32
    %66 = vector.shape_cast %20 : vector<1x256xi1> to vector<1x256xi1>
    %67 = vector.broadcast %66 : vector<1x256xi1> to vector<8x256xi1>
    %68 = vector.broadcast %cst_37 : f32 to vector<8x256xf32>
    %69 = arith.select %67, %65, %68 : vector<8x256xi1>, vector<8x256xf32>
    %c5 = arith.constant 5 : index
    %c0_38 = arith.constant 0 : index
    %c0_39 = arith.constant 0 : index
    %70 = vector.load %arg2[%c5, %c0_38, %c0_39] : memref<9x8x8xf32, #tpu.memory_space<vmem>>, vector<1x8x8xf32>
    %71 = vector.shape_cast %70 : vector<1x8x8xf32> to vector<8x8xf32>
    %cst_40 = arith.constant dense<0.000000e+00> : vector<8x256xf32>
    %72 = tpu.matmul %71, %69, %cst_40 {dimension_numbers = #tpu.dot_dimension_numbers<[1], [0], [0], [1], [0, 0, 1, 1], [], []>} : vector<8x8xf32>, vector<8x256xf32>, vector<8x256xf32> -> vector<8x256xf32>
    %73 = arith.addf %64, %72 : vector<8x256xf32>
    %c0_41 = arith.constant 0 : index
    %c143 = arith.constant 143 : index
    %74 = vector.load %arg7[%c0_41, %c143] : memref<8x512xf32, #tpu.memory_space<vmem>>, vector<8x256xf32>
    %cst_42 = arith.constant 0.000000e+00 : f32
    %75 = vector.shape_cast %18 : vector<1x256xi1> to vector<1x256xi1>
    %76 = vector.broadcast %75 : vector<1x256xi1> to vector<8x256xi1>
    %77 = vector.broadcast %cst_42 : f32 to vector<8x256xf32>
    %78 = arith.select %76, %74, %77 : vector<8x256xi1>, vector<8x256xf32>
    %c6 = arith.constant 6 : index
    %c0_43 = arith.constant 0 : index
    %c0_44 = arith.constant 0 : index
    %79 = vector.load %arg2[%c6, %c0_43, %c0_44] : memref<9x8x8xf32, #tpu.memory_space<vmem>>, vector<1x8x8xf32>
    %80 = vector.shape_cast %79 : vector<1x8x8xf32> to vector<8x8xf32>
    %cst_45 = arith.constant dense<0.000000e+00> : vector<8x256xf32>
    %81 = tpu.matmul %80, %78, %cst_45 {dimension_numbers = #tpu.dot_dimension_numbers<[1], [0], [0], [1], [0, 0, 1, 1], [], []>} : vector<8x8xf32>, vector<8x256xf32>, vector<8x256xf32> -> vector<8x256xf32>
    %82 = arith.addf %73, %81 : vector<8x256xf32>
    %c0_46 = arith.constant 0 : index
    %c144 = arith.constant 144 : index
    %83 = vector.load %arg7[%c0_46, %c144] : memref<8x512xf32, #tpu.memory_space<vmem>>, vector<8x256xf32>
    %c7 = arith.constant 7 : index
    %c0_47 = arith.constant 0 : index
    %c0_48 = arith.constant 0 : index
    %84 = vector.load %arg2[%c7, %c0_47, %c0_48] : memref<9x8x8xf32, #tpu.memory_space<vmem>>, vector<1x8x8xf32>
    %85 = vector.shape_cast %84 : vector<1x8x8xf32> to vector<8x8xf32>
    %cst_49 = arith.constant dense<0.000000e+00> : vector<8x256xf32>
    %86 = tpu.matmul %85, %83, %cst_49 {dimension_numbers = #tpu.dot_dimension_numbers<[1], [0], [0], [1], [0, 0, 1, 1], [], []>} : vector<8x8xf32>, vector<8x256xf32>, vector<8x256xf32> -> vector<8x256xf32>
    %87 = arith.addf %82, %86 : vector<8x256xf32>
    %c0_50 = arith.constant 0 : index
    %c145 = arith.constant 145 : index
    %88 = vector.load %arg7[%c0_50, %c145] : memref<8x512xf32, #tpu.memory_space<vmem>>, vector<8x256xf32>
    %cst_51 = arith.constant 0.000000e+00 : f32
    %89 = vector.shape_cast %20 : vector<1x256xi1> to vector<1x256xi1>
    %90 = vector.broadcast %89 : vector<1x256xi1> to vector<8x256xi1>
    %91 = vector.broadcast %cst_51 : f32 to vector<8x256xf32>
    %92 = arith.select %90, %88, %91 : vector<8x256xi1>, vector<8x256xf32>
    %c8 = arith.constant 8 : index
    %c0_52 = arith.constant 0 : index
    %c0_53 = arith.constant 0 : index
    %93 = vector.load %arg2[%c8, %c0_52, %c0_53] : memref<9x8x8xf32, #tpu.memory_space<vmem>>, vector<1x8x8xf32>
    %94 = vector.shape_cast %93 : vector<1x8x8xf32> to vector<8x8xf32>
    %cst_54 = arith.constant dense<0.000000e+00> : vector<8x256xf32>
    %95 = tpu.matmul %94, %92, %cst_54 {dimension_numbers = #tpu.dot_dimension_numbers<[1], [0], [0], [1], [0, 0, 1, 1], [], []>} : vector<8x8xf32>, vector<8x256xf32>, vector<8x256xf32> -> vector<8x256xf32>
    %96 = arith.addf %87, %95 : vector<8x256xf32>
    %c0_55 = arith.constant 0 : index
    %c0_56 = arith.constant 0 : index
    %97 = vector.load %arg3[%c0_55, %c0_56] : memref<8x1xf32, #tpu.memory_space<vmem>>, vector<8x1xf32>
    %98 = vector.broadcast %97 : vector<8x1xf32> to vector<8x256xf32>
    %99 = arith.addf %96, %98 : vector<8x256xf32>
    %cst_57 = arith.constant 0.000000e+00 : f32
    %100 = vector.broadcast %cst_57 : f32 to vector<8x256xf32>
    %101 = arith.maximumf %99, %100 : vector<8x256xf32>
    %c0_58 = arith.constant 0 : index
    %c128_59 = arith.constant 128 : index
    %102 = vector.load %arg7[%c0_58, %c128_59] : memref<8x512xf32, #tpu.memory_space<vmem>>, vector<8x256xf32>
    tpu.vector_store %arg7[%c0_58, %c128_59], %101 {strides = array<i32>} : memref<8x512xf32, #tpu.memory_space<vmem>>, vector<8x256xf32>,
    %cst_60 = arith.constant 0.000000e+00 : f32
    %103 = vector.broadcast %cst_60 : f32 to vector<8x256xf32>
    %c0_61 = arith.constant 0 : index
    %c111_62 = arith.constant 111 : index
    %104 = vector.load %arg7[%c0_61, %c111_62] : memref<8x512xf32, #tpu.memory_space<vmem>>, vector<8x256xf32>
    %cst_63 = arith.constant 0.000000e+00 : f32
    %105 = vector.shape_cast %18 : vector<1x256xi1> to vector<1x256xi1>
    %106 = vector.broadcast %105 : vector<1x256xi1> to vector<8x256xi1>
    %107 = vector.broadcast %cst_63 : f32 to vector<8x256xf32>
    %108 = arith.select %106, %104, %107 : vector<8x256xi1>, vector<8x256xf32>
    %c0_64 = arith.constant 0 : index
    %c0_65 = arith.constant 0 : index
    %c0_66 = arith.constant 0 : index
    %109 = vector.load %arg4[%c0_64, %c0_65, %c0_66] : memref<9x8x8xf32, #tpu.memory_space<vmem>>, vector<1x8x8xf32>
    %110 = vector.shape_cast %109 : vector<1x8x8xf32> to vector<8x8xf32>
    %cst_67 = arith.constant dense<0.000000e+00> : vector<8x256xf32>
    %111 = tpu.matmul %110, %108, %cst_67 {dimension_numbers = #tpu.dot_dimension_numbers<[1], [0], [0], [1], [0, 0, 1, 1], [], []>} : vector<8x8xf32>, vector<8x256xf32>, vector<8x256xf32> -> vector<8x256xf32>
    %112 = arith.addf %103, %111 : vector<8x256xf32>
    %c0_68 = arith.constant 0 : index
    %c112_69 = arith.constant 112 : index
    %113 = vector.load %arg7[%c0_68, %c112_69] : memref<8x512xf32, #tpu.memory_space<vmem>>, vector<8x256xf32>
    %c1_70 = arith.constant 1 : index
    %c0_71 = arith.constant 0 : index
    %c0_72 = arith.constant 0 : index
    %114 = vector.load %arg4[%c1_70, %c0_71, %c0_72] : memref<9x8x8xf32, #tpu.memory_space<vmem>>, vector<1x8x8xf32>
    %115 = vector.shape_cast %114 : vector<1x8x8xf32> to vector<8x8xf32>
    %cst_73 = arith.constant dense<0.000000e+00> : vector<8x256xf32>
    %116 = tpu.matmul %115, %113, %cst_73 {dimension_numbers = #tpu.dot_dimension_numbers<[1], [0], [0], [1], [0, 0, 1, 1], [], []>} : vector<8x8xf32>, vector<8x256xf32>, vector<8x256xf32> -> vector<8x256xf32>
    %117 = arith.addf %112, %116 : vector<8x256xf32>
    %c0_74 = arith.constant 0 : index
    %c113_75 = arith.constant 113 : index
    %118 = vector.load %arg7[%c0_74, %c113_75] : memref<8x512xf32, #tpu.memory_space<vmem>>, vector<8x256xf32>
    %cst_76 = arith.constant 0.000000e+00 : f32
    %119 = vector.shape_cast %20 : vector<1x256xi1> to vector<1x256xi1>
    %120 = vector.broadcast %119 : vector<1x256xi1> to vector<8x256xi1>
    %121 = vector.broadcast %cst_76 : f32 to vector<8x256xf32>
    %122 = arith.select %120, %118, %121 : vector<8x256xi1>, vector<8x256xf32>
    %c2_77 = arith.constant 2 : index
    %c0_78 = arith.constant 0 : index
    %c0_79 = arith.constant 0 : index
    %123 = vector.load %arg4[%c2_77, %c0_78, %c0_79] : memref<9x8x8xf32, #tpu.memory_space<vmem>>, vector<1x8x8xf32>
    %124 = vector.shape_cast %123 : vector<1x8x8xf32> to vector<8x8xf32>
    %cst_80 = arith.constant dense<0.000000e+00> : vector<8x256xf32>
    %125 = tpu.matmul %124, %122, %cst_80 {dimension_numbers = #tpu.dot_dimension_numbers<[1], [0], [0], [1], [0, 0, 1, 1], [], []>} : vector<8x8xf32>, vector<8x256xf32>, vector<8x256xf32> -> vector<8x256xf32>
    %126 = arith.addf %117, %125 : vector<8x256xf32>
    %c0_81 = arith.constant 0 : index
    %c127_82 = arith.constant 127 : index
    %127 = vector.load %arg7[%c0_81, %c127_82] : memref<8x512xf32, #tpu.memory_space<vmem>>, vector<8x256xf32>
    %cst_83 = arith.constant 0.000000e+00 : f32
    %128 = vector.shape_cast %18 : vector<1x256xi1> to vector<1x256xi1>
    %129 = vector.broadcast %128 : vector<1x256xi1> to vector<8x256xi1>
    %130 = vector.broadcast %cst_83 : f32 to vector<8x256xf32>
    %131 = arith.select %129, %127, %130 : vector<8x256xi1>, vector<8x256xf32>
    %c3_84 = arith.constant 3 : index
    %c0_85 = arith.constant 0 : index
    %c0_86 = arith.constant 0 : index
    %132 = vector.load %arg4[%c3_84, %c0_85, %c0_86] : memref<9x8x8xf32, #tpu.memory_space<vmem>>, vector<1x8x8xf32>
    %133 = vector.shape_cast %132 : vector<1x8x8xf32> to vector<8x8xf32>
    %cst_87 = arith.constant dense<0.000000e+00> : vector<8x256xf32>
    %134 = tpu.matmul %133, %131, %cst_87 {dimension_numbers = #tpu.dot_dimension_numbers<[1], [0], [0], [1], [0, 0, 1, 1], [], []>} : vector<8x8xf32>, vector<8x256xf32>, vector<8x256xf32> -> vector<8x256xf32>
    %135 = arith.addf %126, %134 : vector<8x256xf32>
    %c0_88 = arith.constant 0 : index
    %c128_89 = arith.constant 128 : index
    %136 = vector.load %arg7[%c0_88, %c128_89] : memref<8x512xf32, #tpu.memory_space<vmem>>, vector<8x256xf32>
    %c4_90 = arith.constant 4 : index
    %c0_91 = arith.constant 0 : index
    %c0_92 = arith.constant 0 : index
    %137 = vector.load %arg4[%c4_90, %c0_91, %c0_92] : memref<9x8x8xf32, #tpu.memory_space<vmem>>, vector<1x8x8xf32>
    %138 = vector.shape_cast %137 : vector<1x8x8xf32> to vector<8x8xf32>
    %cst_93 = arith.constant dense<0.000000e+00> : vector<8x256xf32>
    %139 = tpu.matmul %138, %136, %cst_93 {dimension_numbers = #tpu.dot_dimension_numbers<[1], [0], [0], [1], [0, 0, 1, 1], [], []>} : vector<8x8xf32>, vector<8x256xf32>, vector<8x256xf32> -> vector<8x256xf32>
    %140 = arith.addf %135, %139 : vector<8x256xf32>
    %c0_94 = arith.constant 0 : index
    %c129_95 = arith.constant 129 : index
    %141 = vector.load %arg7[%c0_94, %c129_95] : memref<8x512xf32, #tpu.memory_space<vmem>>, vector<8x256xf32>
    %cst_96 = arith.constant 0.000000e+00 : f32
    %142 = vector.shape_cast %20 : vector<1x256xi1> to vector<1x256xi1>
    %143 = vector.broadcast %142 : vector<1x256xi1> to vector<8x256xi1>
    %144 = vector.broadcast %cst_96 : f32 to vector<8x256xf32>
    %145 = arith.select %143, %141, %144 : vector<8x256xi1>, vector<8x256xf32>
    %c5_97 = arith.constant 5 : index
    %c0_98 = arith.constant 0 : index
    %c0_99 = arith.constant 0 : index
    %146 = vector.load %arg4[%c5_97, %c0_98, %c0_99] : memref<9x8x8xf32, #tpu.memory_space<vmem>>, vector<1x8x8xf32>
    %147 = vector.shape_cast %146 : vector<1x8x8xf32> to vector<8x8xf32>
    %cst_100 = arith.constant dense<0.000000e+00> : vector<8x256xf32>
    %148 = tpu.matmul %147, %145, %cst_100 {dimension_numbers = #tpu.dot_dimension_numbers<[1], [0], [0], [1], [0, 0, 1, 1], [], []>} : vector<8x8xf32>, vector<8x256xf32>, vector<8x256xf32> -> vector<8x256xf32>
    %149 = arith.addf %140, %148 : vector<8x256xf32>
    %c0_101 = arith.constant 0 : index
    %c143_102 = arith.constant 143 : index
    %150 = vector.load %arg7[%c0_101, %c143_102] : memref<8x512xf32, #tpu.memory_space<vmem>>, vector<8x256xf32>
    %cst_103 = arith.constant 0.000000e+00 : f32
    %151 = vector.shape_cast %18 : vector<1x256xi1> to vector<1x256xi1>
    %152 = vector.broadcast %151 : vector<1x256xi1> to vector<8x256xi1>
    %153 = vector.broadcast %cst_103 : f32 to vector<8x256xf32>
    %154 = arith.select %152, %150, %153 : vector<8x256xi1>, vector<8x256xf32>
    %c6_104 = arith.constant 6 : index
    %c0_105 = arith.constant 0 : index
    %c0_106 = arith.constant 0 : index
    %155 = vector.load %arg4[%c6_104, %c0_105, %c0_106] : memref<9x8x8xf32, #tpu.memory_space<vmem>>, vector<1x8x8xf32>
    %156 = vector.shape_cast %155 : vector<1x8x8xf32> to vector<8x8xf32>
    %cst_107 = arith.constant dense<0.000000e+00> : vector<8x256xf32>
    %157 = tpu.matmul %156, %154, %cst_107 {dimension_numbers = #tpu.dot_dimension_numbers<[1], [0], [0], [1], [0, 0, 1, 1], [], []>} : vector<8x8xf32>, vector<8x256xf32>, vector<8x256xf32> -> vector<8x256xf32>
    %158 = arith.addf %149, %157 : vector<8x256xf32>
    %c0_108 = arith.constant 0 : index
    %c144_109 = arith.constant 144 : index
    %159 = vector.load %arg7[%c0_108, %c144_109] : memref<8x512xf32, #tpu.memory_space<vmem>>, vector<8x256xf32>
    %c7_110 = arith.constant 7 : index
    %c0_111 = arith.constant 0 : index
    %c0_112 = arith.constant 0 : index
    %160 = vector.load %arg4[%c7_110, %c0_111, %c0_112] : memref<9x8x8xf32, #tpu.memory_space<vmem>>, vector<1x8x8xf32>
    %161 = vector.shape_cast %160 : vector<1x8x8xf32> to vector<8x8xf32>
    %cst_113 = arith.constant dense<0.000000e+00> : vector<8x256xf32>
    %162 = tpu.matmul %161, %159, %cst_113 {dimension_numbers = #tpu.dot_dimension_numbers<[1], [0], [0], [1], [0, 0, 1, 1], [], []>} : vector<8x8xf32>, vector<8x256xf32>, vector<8x256xf32> -> vector<8x256xf32>
    %163 = arith.addf %158, %162 : vector<8x256xf32>
    %c0_114 = arith.constant 0 : index
    %c145_115 = arith.constant 145 : index
    %164 = vector.load %arg7[%c0_114, %c145_115] : memref<8x512xf32, #tpu.memory_space<vmem>>, vector<8x256xf32>
    %cst_116 = arith.constant 0.000000e+00 : f32
    %165 = vector.shape_cast %20 : vector<1x256xi1> to vector<1x256xi1>
    %166 = vector.broadcast %165 : vector<1x256xi1> to vector<8x256xi1>
    %167 = vector.broadcast %cst_116 : f32 to vector<8x256xf32>
    %168 = arith.select %166, %164, %167 : vector<8x256xi1>, vector<8x256xf32>
    %c8_117 = arith.constant 8 : index
    %c0_118 = arith.constant 0 : index
    %c0_119 = arith.constant 0 : index
    %169 = vector.load %arg4[%c8_117, %c0_118, %c0_119] : memref<9x8x8xf32, #tpu.memory_space<vmem>>, vector<1x8x8xf32>
    %170 = vector.shape_cast %169 : vector<1x8x8xf32> to vector<8x8xf32>
    %cst_120 = arith.constant dense<0.000000e+00> : vector<8x256xf32>
    %171 = tpu.matmul %170, %168, %cst_120 {dimension_numbers = #tpu.dot_dimension_numbers<[1], [0], [0], [1], [0, 0, 1, 1], [], []>} : vector<8x8xf32>, vector<8x256xf32>, vector<8x256xf32> -> vector<8x256xf32>
    %172 = arith.addf %163, %171 : vector<8x256xf32>
    %c0_121 = arith.constant 0 : index
    %c0_122 = arith.constant 0 : index
    %173 = vector.load %arg5[%c0_121, %c0_122] : memref<8x1xf32, #tpu.memory_space<vmem>>, vector<8x1xf32>
    %174 = vector.broadcast %173 : vector<8x1xf32> to vector<8x256xf32>
    %175 = arith.addf %172, %174 : vector<8x256xf32>
    %176 = arith.addf %175, %25 : vector<8x256xf32>
    %cst_123 = arith.constant 0.000000e+00 : f32
    %177 = vector.broadcast %cst_123 : f32 to vector<8x256xf32>
    %178 = arith.maximumf %176, %177 : vector<8x256xf32>
    %c0_124 = arith.constant 0 : index
    %c0_125 = arith.constant 0 : index
    %c0_126 = arith.constant 0 : index
    %179 = vector.load %arg6[%c0_124, %c0_125, %c0_126] : memref<1x8x256xf32, #tpu.memory_space<vmem>>, vector<1x8x256xf32>
    %180 = vector.shape_cast %179 : vector<1x8x256xf32> to vector<8x256xf32>
    %181 = vector.shape_cast %178 : vector<8x256xf32> to vector<1x8x256xf32>
    tpu.vector_store %arg6[%c0_124, %c0_125, %c0_126], %181 {strides = array<i32>} : memref<1x8x256xf32, #tpu.memory_space<vmem>>, vector<1x8x256xf32>,
    return
  }
  func.func @transform_0(%arg0: i32) -> (i32, i32, i32) {
    %c0_i32 = arith.constant 0 : i32
    %c0_i32_0 = arith.constant 0 : i32
    %c0_i32_1 = arith.constant 0 : i32
    return %arg0, %c0_i32, %c0_i32_0 : i32, i32, i32
  }
  func.func @transform_1(%arg0: i32) -> (i32, i32, i32) {
    %c0_i32 = arith.constant 0 : i32
    %c0_i32_0 = arith.constant 0 : i32
    %c0_i32_1 = arith.constant 0 : i32
    %c0_i32_2 = arith.constant 0 : i32
    return %c0_i32, %c0_i32_0, %c0_i32_1 : i32, i32, i32
  }
  func.func @transform_2(%arg0: i32) -> (i32, i32) {
    %c0_i32 = arith.constant 0 : i32
    %c0_i32_0 = arith.constant 0 : i32
    %c0_i32_1 = arith.constant 0 : i32
    return %c0_i32, %c0_i32_0 : i32, i32
  }
  func.func @transform_3(%arg0: i32) -> (i32, i32, i32) {
    %c0_i32 = arith.constant 0 : i32
    %c0_i32_0 = arith.constant 0 : i32
    %c0_i32_1 = arith.constant 0 : i32
    %c0_i32_2 = arith.constant 0 : i32
    return %c0_i32, %c0_i32_0, %c0_i32_1 : i32, i32, i32
  }
  func.func @transform_4(%arg0: i32) -> (i32, i32) {
    %c0_i32 = arith.constant 0 : i32
    %c0_i32_0 = arith.constant 0 : i32
    %c0_i32_1 = arith.constant 0 : i32
    return %c0_i32, %c0_i32_0 : i32, i32
  }
  func.func @transform_5(%arg0: i32) -> (i32, i32, i32) {
    %c0_i32 = arith.constant 0 : i32
    %c0_i32_0 = arith.constant 0 : i32
    %c0_i32_1 = arith.constant 0 : i32
    return %arg0, %c0_i32, %c0_i32_0 : i32, i32, i32
  }
}

</mosaic_0001>

<bundles_post_ra>
// kernel: tpu_custom_call.1
= control target key start
LH: loop header
LB: loop body
LE: loop exit
PB: predicated region body
PF: predicated region fallthrough
CT: control target
= control target key end

     0   :  { %v1809_v1 = vmov 0.0   ;;  %s1810_s20 = smov 16   ;;  %s2161_s0 = inlined_call_operand.vmem [shape: f32[1,8,256], index: 0, kind: input, shape index: {}]   ;;  %s2162_s1 = inlined_call_operand.vmem [shape: f32[9,8,8], index: 1, kind: input, shape index: {}]   ;;  %s2163_s2 = inlined_call_operand.vmem [shape: f32[8,1], index: 2, kind: input, shape index: {}]   ;;  %s2164_s3 = inlined_call_operand.vmem [shape: f32[9,8,8], index: 3, kind: input, shape index: {}]   ;;  %s2165_s4 = inlined_call_operand.vmem [shape: f32[8,1], index: 4, kind: input, shape index: {}]   ;;  %s2166_s5 = inlined_call_operand.hbm [shape: f32[1,8,256], index: 5, kind: output, shape index: {}]  }
   0x1   :  { %v1853_v0 = vld [vmem:[%s2161_s0] sm:$0xff]  ;;  %84 = vrot.lane.b32.xlu1 %v1809_v1, %s1810_s20 }
   0x2   :  { %86 = vrot.lane.b32.xlu0 %v1853_v0, %s1810_s20 }
   0x3   :  { %10 = vsyncpa [#allocation4], 0  ;;  %v1862_v2 = vld [vmem:[%s2161_s0 + $0x8] sm:$0xff]  ;;  %163 = vmatprep.mubr.f32.mxu0 %v1809_v1  ;;  %237 = vmatprep.mubr.f32.mxu1 %v1809_v1  ;;  %s1811_s23 = smov 17   ;;  %s1812_s24 = smov 15   ;;  %v1816_v3 = vmov 0   ;;  %v21_v5 = vlaneseq }
   0x4   :  { %s1813_s0 = smov 1   ;;  %s1814_s25 = smov 127   ;;  %1786 = vset.pattern.permute.xlu0 %v1816_v3  ;;  %v876_v4 = vld [vmem:[%s2163_s2] sm:$0xff]  ;;  %vm90_vm0 = vcmask 130048   ;;  %v1717_v15 = vld [vmem:[%s2162_s1 + $0x8] sm:$0xff]  ;;  %vm95_vm1 = vcmask 64512  }
   0x5   :  { %70 = vrot.lane.b32.xlu1 %v1853_v0, %s1811_s23  ;;  %s1815_s26 = smov 113   ;;  %s1817_s27 = smov 112   ;;  %v22_v6 = vand.u32 127, %v21_v5  ;;  %vm74_vm2 = vcmask 138240   ;;  %v81_v23 = vld [vmem:[%s2162_s1] sm:$0xff]  ;;  %vm254_vm5 = vcmask 121856  }
   0x6   :  { %88 = vrot.lane.b32.xlu0 %v1862_v2, %s1810_s20  ;;  %s1818_s28 = smov 111   ;;  %v1722_v31 = vld [vmem:[%s2162_s1 + $0x10] sm:$0xff]  ;;  %vm345_vm8 = vcmask 7168   ;;  %v1730_v35 = vld [vmem:[%s2162_s1 + $0x20] sm:$0xff]  ;;  %v1726_v38 = vld [vmem:[%s2162_s1 + $0x18] sm:$0xff]  ;;  %vm520_vm9 = vcmask 1039360  }
   0x7   :  { %v23_v7 = vadd.s32 128, %v22_v6  ;;  %v28_v13 = vand.u32 15, %v22_v6  ;;  %v1732_v44 = vld [vmem:[%s2162_s1 + $0x28] sm:$0xff]  ;;  %vm611_vm10 = vcmask 924672   ;;  %v1736_v50 = vld [vmem:[%s2162_s1 + $0x30] sm:$0xff]  ;;  %vm704_vm11 = vcmask 916480  }
   0x8   :  { %v1740_v56 = vld [vmem:[%s2162_s1 + $0x38] sm:$0xff]  ;;  %vm791_vm12 = vcmask 908288   ;;  %v1742_v62 = vld [vmem:[%s2162_s1 + $0x40] sm:$0xff] }
   0x9   :  { %68 = vrot.lane.b32.xlu1 %v1809_v1, %s1811_s23  ;;  %v35_v10 = vand.u32 15, %v23_v7  ;;  %vm1934_vm4 = vcmp.ne.s32.totalorder %v28_v13, 0  ;;  %vm1958_vm7 = vcmp.ne.s32.totalorder %v28_v13, 15  ;;  %v1771_v17 = vld [vmem:[%s2164_s3 + $0x40] sm:$0xff] }
   0xa   :  { %72 = vrot.lane.b32.xlu0 %v1862_v2, %s1811_s23 }
   0xb   :  { %vm1930_vm3 = vcmp.ne.s32.totalorder %v35_v10, 0  ;;  %vm1949_vm6 = vcmp.ne.s32.totalorder %v35_v10, 15 }
   0xd   :  { %252 = vrot.lane.b32.xlu1 %v1862_v2, %s1812_s24 }
   0xe   :  { %250 = vrot.lane.b32.xlu0 %v1853_v0, %s1812_s24 }
  0x11   :  { %341 = vrot.lane.b32.xlu1 %v1853_v0, %s1813_s0 }
  0x12   :  { %248 = vrot.lane.b32.xlu0 %v1809_v1, %s1812_s24 }
  0x15   :  { %339 = vrot.lane.b32.xlu1 %v1809_v1, %s1813_s0 }
  0x16   :  { %343 = vrot.lane.b32.xlu0 %v1862_v2, %s1813_s0 }
  0x19   :  { %518 = vrot.lane.b32.xlu1 %v1809_v1, %s1814_s25 }
  0x1a   :  { %516 = vrot.lane.b32.xlu0 %v1862_v2, %s1814_s25 }
  0x1d   :  { %607 = vrot.lane.b32.xlu1 %v1862_v2, %s1815_s26 }
  0x1e   :  { %514 = vrot.lane.b32.xlu0 %v1853_v0, %s1814_s25 }
  0x21   :  { %605 = vrot.lane.b32.xlu1 %v1853_v0, %s1815_s26 }
  0x22   :  { %609 = vrot.lane.b32.xlu0 %v1809_v1, %s1815_s26 }
  0x25   :  { %702 = vrot.lane.b32.xlu1 %v1809_v1, %s1817_s27 }
  0x26   :  { %700 = vrot.lane.b32.xlu0 %v1862_v2, %s1817_s27 }
  0x29   :  { %787 = vrot.lane.b32.xlu1 %v1862_v2, %s1818_s28 }
  0x2a   :  { %698 = vrot.lane.b32.xlu0 %v1853_v0, %s1817_s27 }
  0x2d   :  { %785 = vrot.lane.b32.xlu1 %v1853_v0, %s1818_s28 }
  0x2e   :  { %789 = vrot.lane.b32.xlu0 %v1809_v1, %s1818_s28 }
  0x31   :  { %894 = vrot.lane.b32.xlu1 %v1809_v1, %s1811_s23 }
  0x32   :  { %879 = vperm.xlu0 %1786, %v876_v4  }
  0x35   :  { %1157 = vrot.lane.b32.xlu1 %v1809_v1, %s1813_s0 }
  0x36   :  { %909 = vrot.lane.b32.xlu0 %v1809_v1, %s1810_s20 }
  0x39   :  { %1335 = vrot.lane.b32.xlu1 %v1809_v1, %s1814_s25 }
  0x3a   :  { %1067 = vrot.lane.b32.xlu0 %v1809_v1, %s1812_s24 }
  0x3e   :  { %1425 = vrot.lane.b32.xlu0 %v1809_v1, %s1815_s26 }
  0x73   :  { %v85_v8 = vpop.permute.xlu1 %84 }
  0x74   :  { %v87_v9 = vpop.permute.xlu0 %86 }
  0x75   :  { %v91_v16 = vsel %vm90_vm0, %v85_v8, %v87_v9 }
  0x77   :  { %v71_v11 = vpop.permute.xlu1 %70 }
  0x78   :  { %v89_v12 = vpop.permute.xlu0 %88 }
  0x79   :  { %v92_v14 = vsel %vm90_vm0, %v87_v9, %v89_v12 }
  0x7a   :  { %129 = vmatprep.subr.mxu0 %v92_v14 }
  0x7b   :  { %130 = vmatpush1.msra.mxu0 %v91_v16  ;;  %v69_v18 = vpop.permute.xlu1 %68 }
  0x7c   :  { %v73_v19 = vpop.permute.xlu0 %72  ;;  %1718 = vmatmul.mubr.msk.f32.vlgmr.msra.gmra.mxu0 %vm95_vm1, %v1717_v15  ;;  %v75_v22 = vsel %vm74_vm2, %v69_v18, %v71_v11 }
  0x7d   :  { %v76_v21 = vsel %vm74_vm2, %v71_v11, %v73_v19  ;;  %330 = vmatprep.mubr.f32.mxu0 %v1809_v1 }
  0x7e   :  { %1719 = vmatprep.subr.msk.mxu1 %vm1930_vm3, %v76_v21 }
  0x7f   :  { %1720 = vmatpush1.msk.msra.mxu1 %vm1934_vm4, %v75_v22  ;;  %v253_v25 = vpop.permute.xlu1 %252 }
  0x80   :  { %v251_v26 = vpop.permute.xlu0 %250  ;;  %1721 = vmatmul.mubr.msk.f32.vlgmr.msra.gmra.mxu1 %vm95_vm1, %v81_v23 }
  0x81   :  { %v256_v27 = vsel %vm254_vm5, %v251_v26, %v253_v25  ;;  %421 = vmatprep.mubr.f32.mxu1 %v1809_v1 }
  0x82   :  { %1723 = vmatprep.subr.msk.mxu0 %vm1949_vm6, %v256_v27 }
  0x83   :  { %v342_v29 = vpop.permute.xlu1 %341 }
  0x84   :  { %v249_v30 = vpop.permute.xlu0 %248 }
  0x85   :  { %v255_v32 = vsel %vm254_vm5, %v249_v30, %v251_v26 }
  0x86   :  { %1724 = vmatpush1.msk.msra.mxu0 %vm1958_vm7, %v255_v32 }
  0x87   :  { %1725 = vmatmul.mubr.msk.f32.vlgmr.msra.gmra.mxu0 %vm95_vm1, %v1722_v31  ;;  %465 = vmatprep.subr.mxu0 %v1862_v2  ;;  %v340_v33 = vpop.permute.xlu1 %339 }
  0x88   :  { %v344_v34 = vpop.permute.xlu0 %343  ;;  %466 = vmatpush1.msra.mxu0 %v1853_v0  ;;  %499 = vmatprep.mubr.f32.mxu0 %v1809_v1  ;;  %v346_v36 = vsel %vm345_vm8, %v340_v33, %v342_v29 }
  0x89   :  { %v347_v37 = vsel %vm345_vm8, %v342_v29, %v344_v34 }
  0x8a   :  { %1727 = vmatprep.subr.msk.mxu1 %vm1930_vm3, %v347_v37 }
  0x8b   :  { %1728 = vmatpush1.msk.msra.mxu1 %vm1934_vm4, %v346_v36  ;;  %1731 = vmatmul.mubr.msk.f32.vlgmr.msra.gmra.mxu0 %vm95_vm1, %v1730_v35  ;;  %v519_v39 = vpop.permute.xlu1 %518 }
  0x8c   :  { %v517_v40 = vpop.permute.xlu0 %516  ;;  %1729 = vmatmul.mubr.msk.f32.vlgmr.msra.gmra.mxu1 %vm95_vm1, %v1726_v38  ;;  %687 = vmatprep.mubr.f32.mxu0 %v1809_v1 }
  0x8d   :  { %v522_v41 = vsel %vm520_vm9, %v517_v40, %v519_v39  ;;  %596 = vmatprep.mubr.f32.mxu1 %v1809_v1 }
  0x8e   :  { %1733 = vmatprep.subr.msk.mxu1 %vm1949_vm6, %v522_v41 }
  0x8f   :  { %v608_v42 = vpop.permute.xlu1 %607 }
  0x90   :  { %v515_v43 = vpop.permute.xlu0 %514 }
  0x91   :  { %v521_v45 = vsel %vm520_vm9, %v515_v43, %v517_v40 }
  0x92   :  { %1734 = vmatpush1.msk.msra.mxu1 %vm1958_vm7, %v521_v45  ;;  %v1689_v45 = vld [vmem:[%s2165_s4] sm:$0xff] }
  0x93   :  { %1735 = vmatmul.mubr.msk.f32.vlgmr.msra.gmra.mxu1 %vm95_vm1, %v1732_v44  ;;  %v606_v46 = vpop.permute.xlu1 %605 }
  0x94   :  { %v610_v47 = vpop.permute.xlu0 %609  ;;  %776 = vmatprep.mubr.f32.mxu1 %v1809_v1  ;;  %v612_v48 = vsel %vm611_vm10, %v606_v46, %v608_v42 }
  0x95   :  { %v613_v49 = vsel %vm611_vm10, %v608_v42, %v610_v47 }
  0x96   :  { %1737 = vmatprep.subr.msk.mxu0 %vm1930_vm3, %v613_v49 }
  0x97   :  { %1738 = vmatpush1.msk.msra.mxu0 %vm1934_vm4, %v612_v48  ;;  %v703_v51 = vpop.permute.xlu1 %702 }
  0x98   :  { %v701_v52 = vpop.permute.xlu0 %700  ;;  %1739 = vmatmul.mubr.msk.f32.vlgmr.msra.gmra.mxu0 %vm95_vm1, %v1736_v50 }
  0x99   :  { %v706_v53 = vsel %vm704_vm11, %v701_v52, %v703_v51  ;;  %867 = vmatprep.mubr.f32.mxu0 %v1809_v1 }
  0x9a   :  { %742 = vmatprep.subr.mxu1 %v706_v53 }
  0x9b   :  { %v788_v54 = vpop.permute.xlu1 %787 }
  0x9c   :  { %v699_v55 = vpop.permute.xlu0 %698 }
  0x9d   :  { %v705_v57 = vsel %vm704_vm11, %v699_v55, %v701_v52 }
  0x9e   :  { %743 = vmatpush1.msra.mxu1 %v705_v57 }
  0x9f   :  { %1741 = vmatmul.mubr.msk.f32.vlgmr.msra.gmra.mxu1 %vm95_vm1, %v1740_v56  ;;  %v786_v58 = vpop.permute.xlu1 %785 }
  0xa0   :  { %v790_v59 = vpop.permute.xlu0 %789  ;;  %986 = vmatprep.mubr.f32.mxu1 %v1809_v1  ;;  %v792_v60 = vsel %vm791_vm12, %v786_v58, %v788_v54 }
  0xa1   :  { %v793_v61 = vsel %vm791_vm12, %v788_v54, %v790_v59  ;;  %v906_v59 = vld [vmem:[%s2164_s3] sm:$0xff] }
  0xa2   :  { %1743 = vmatprep.subr.msk.mxu0 %vm1949_vm6, %v793_v61 }
  0xa3   :  { %1744 = vmatpush1.msk.msra.mxu0 %vm1958_vm7, %v792_v60  ;;  %v895_v46 = vpop.permute.xlu1 %894 }
  0xa4   :  { %1745 = vmatmul.mubr.msk.f32.vlgmr.msra.gmra.mxu0 %vm95_vm1, %v1742_v62 }
  0xa5   :  { %1060 = vmatprep.mubr.f32.mxu0 %v1809_v1 }
  0xa7   :  { %v1158_v48 = vpop.permute.xlu1 %1157 }
  0xab   :  { %v1336_v50 = vpop.permute.xlu1 %1335 }
  0xad   :  { %v880_v34 = vpop.permute.xlu0 %879 }
  0xb1   :  { %v910_v47 = vpop.permute.xlu0 %909 }
  0xb5   :  { %v1068_v49 = vpop.permute.xlu0 %1067 }
  0xb9   :  { %v1426_v51 = vpop.permute.xlu0 %1425 }
 0x13c   :  { %v165_v63 = vpop.f32.mrf.mxu0 }
 0x13e   :  { %v167_v3 = vpop.f32.mrf.mxu0 }
 0x140   :  { %v239_v4 = vpop.f32.mrf.mxu1 }
 0x141   :  { %v240_v5 = vadd.f32 %v239_v4, %v165_v63 }
 0x142   :  { %v241_v6 = vpop.f32.mrf.mxu1 }
 0x143   :  { %v242_v8 = vadd.f32 %v241_v6, %v167_v3  ;;  %v1746_v6 = vld [vmem:[%s2164_s3 + $0x8] sm:$0xff] }
 0x147   :  { %v332_v7 = vpop.f32.mrf.mxu0 }
 0x148   :  { %v337_v9 = vadd.f32 %v332_v7, %v240_v5  ;;  %v1755_v7 = vld [vmem:[%s2164_s3 + $0x18] sm:$0xff] }
 0x149   :  { %v334_v10 = vpop.f32.mrf.mxu0 }
 0x14a   :  { %v338_v12 = vadd.f32 %v334_v10, %v242_v8 }
 0x14b   :  { %v501_v15 = vpop.f32.mrf.mxu0 }
 0x14c   :  { %v423_v11 = vpop.f32.mrf.mxu1 }
 0x14d   :  { %v428_v13 = vadd.f32 %v423_v11, %v337_v9  ;;  %v503_v19 = vpop.f32.mrf.mxu0 }
 0x14e   :  { %v425_v14 = vpop.f32.mrf.mxu1 }
 0x14f   :  { %v429_v16 = vadd.f32 %v425_v14, %v338_v12  ;;  %v506_v18 = vadd.f32 %v501_v15, %v428_v13  ;;  %v1751_v15 = vld [vmem:[%s2164_s3 + $0x10] sm:$0xff] }
 0x151   :  { %v507_v22 = vadd.f32 %v503_v19, %v429_v16 }
 0x153   :  { %v598_v21 = vpop.f32.mrf.mxu1 }
 0x154   :  { %v603_v23 = vadd.f32 %v598_v21, %v506_v18  ;;  %v1761_v18 = vld [vmem:[%s2164_s3 + $0x28] sm:$0xff] }
 0x155   :  { %v600_v25 = vpop.f32.mrf.mxu1 }
 0x156   :  { %v604_v27 = vadd.f32 %v600_v25, %v507_v22  ;;  %v1759_v25 = vld [vmem:[%s2164_s3 + $0x20] sm:$0xff] }
 0x158   :  { %v689_v26 = vpop.f32.mrf.mxu0 }
 0x159   :  { %v694_v29 = vadd.f32 %v689_v26, %v603_v23  ;;  %v1769_v26 = vld [vmem:[%s2164_s3 + $0x38] sm:$0xff] }
 0x15a   :  { %v691_v30 = vpop.f32.mrf.mxu0 }
 0x15b   :  { %v695_v32 = vadd.f32 %v691_v30, %v604_v27 }
 0x15f   :  { %v778_v31 = vpop.f32.mrf.mxu1 }
 0x160   :  { %v783_v33 = vadd.f32 %v778_v31, %v694_v29  ;;  %v1765_v31 = vld [vmem:[%s2164_s3 + $0x30] sm:$0xff]  ;;  %s1819_s3 = smov [#allocation3]  }
 0x161   :  { %v780_v35 = vpop.f32.mrf.mxu1  ;;  %s1709_s14 = sshll.u32 %s1819_s3, 4  ;;  %s1710_s14 = int_to_ptr.vmem [resolvable:$true] %s1709_s14 }
 0x162   :  { %v784_v39 = vadd.f32 %v780_v35, %v695_v32  ;;  %s1787_s15 = scalar_lea.vmem %s1710_s14, 256  ;;  %p1792_p1 = scmp.lt.s32.totalorder %s1710_s14, %s1710_s14 }
 0x163   :  { %p1788_p0 = scmp.ne.s32.totalorder %s1710_s14, %s1787_s15  ;;  %p1793_p2 = scmp.lt.s32.totalorder %s1787_s15, %s1787_s15 }
 0x164   :  { %v869_v36 = vpop.f32.mrf.mxu0 }
 0x165   :  { %v874_v37 = vadd.f32 %v869_v36, %v783_v33  ;;  %p1794_p3 = por %p1793_p2, %p1792_p1 }
 0x166   :  { %v871_v38 = vpop.f32.mrf.mxu0 }
 0x167   :  { %v882_v40 = vadd.f32 %v880_v34, %v874_v37  ;;  %v875_v42 = vadd.f32 %v871_v38, %v784_v39  ;;  %p1795_p4 = pnand %p1794_p3, %p1788_p0 }
 0x169   :  { %v2028_v41 = vmax.f32 %v882_v40, 0.0  ;;  %v883_v43 = vadd.f32 %v880_v34, %v875_v42 }
 0x16b   :  { %1069 = vrot.lane.b32.xlu0 %v2028_v41, %s1812_s24  ;;  %911 = vrot.lane.b32.xlu1 %v2028_v41, %s1810_s20  ;;  %v2038_v44 = vmax.f32 %v883_v43, 0.0 }
 0x16f   :  { %1331 = vrot.lane.b32.xlu0 %v2028_v41, %s1814_s25  ;;  %896 = vrot.lane.b32.xlu1 %v2028_v41, %s1811_s23 }
 0x173   :  { %898 = vrot.lane.b32.xlu0 %v2038_v44, %s1811_s23  ;;  %1159 = vrot.lane.b32.xlu1 %v2028_v41, %s1813_s0 }
 0x177   :  { %1513 = vrot.lane.b32.xlu0 %v2028_v41, %s1817_s27  ;;  %1421 = vrot.lane.b32.xlu1 %v2028_v41, %s1815_s26 }
 0x17b   :  { %1161 = vrot.lane.b32.xlu0 %v2038_v44, %s1813_s0  ;;  %913 = vrot.lane.b32.xlu1 %v2038_v44, %s1810_s20 }
 0x17f   :  { %1333 = vrot.lane.b32.xlu0 %v2038_v44, %s1814_s25  ;;  %1071 = vrot.lane.b32.xlu1 %v2038_v44, %s1812_s24 }
 0x183   :  { %1515 = vrot.lane.b32.xlu0 %v2038_v44, %s1817_s27  ;;  %1517 = vrot.lane.b32.xlu1 %v1809_v1, %s1817_s27 }
 0x187   :  { %1603 = vrot.lane.b32.xlu0 %v1809_v1, %s1818_s28  ;;  %1423 = vrot.lane.b32.xlu1 %v2038_v44, %s1815_s26 }
 0x18b   :  { %1692 = vperm.xlu0 %1786, %v1689_v45   ;;  %1601 = vrot.lane.b32.xlu1 %v2038_v44, %s1818_s28 }
 0x18f   :  { %1599 = vrot.lane.b32.xlu1 %v2028_v41, %s1818_s28 }
 0x1dd   :  { %v1070_v52 = vpop.permute.xlu0 %1069  ;;  %v912_v53 = vpop.permute.xlu1 %911 }
 0x1de   :  { %v915_v8 = vsel %vm90_vm0, %v910_v47, %v912_v53  ;;  %v1073_v16 = vsel %vm254_vm5, %v1068_v49, %v1070_v52 }
 0x1e1   :  { %v1332_v54 = vpop.permute.xlu0 %1331  ;;  %v897_v55 = vpop.permute.xlu1 %896 }
 0x1e2   :  { %v900_v60 = vsel %vm74_vm2, %v895_v46, %v897_v55 }
 0x1e5   :  { %v899_v56 = vpop.permute.xlu0 %898  ;;  %v1160_v57 = vpop.permute.xlu1 %1159 }
 0x1e6   :  { %v901_v58 = vsel %vm74_vm2, %v897_v55, %v899_v56  ;;  %v1163_v9 = vsel %vm345_vm8, %v1158_v48, %v1160_v57 }
 0x1e7   :  { %1748 = vmatprep.subr.msk.mxu0 %vm1930_vm3, %v901_v58 }
 0x1e8   :  { %1749 = vmatpush1.msk.msra.mxu0 %vm1934_vm4, %v900_v60 }
 0x1e9   :  { %v1514_v61 = vpop.permute.xlu0 %1513  ;;  %v1422_v62 = vpop.permute.xlu1 %1421  ;;  %1750 = vmatmul.mubr.msk.f32.vlgmr.msra.gmra.mxu0 %vm95_vm1, %v906_v59 }
 0x1ea   :  { %1238 = vmatprep.mubr.f32.mxu0 %v1809_v1 }
 0x1ed   :  { %v1162_v63 = vpop.permute.xlu0 %1161  ;;  %v914_v3 = vpop.permute.xlu1 %913 }
 0x1ee   :  { %v1164_v4 = vsel %vm345_vm8, %v1160_v57, %v1162_v63  ;;  %v916_v5 = vsel %vm90_vm0, %v912_v53, %v914_v3 }
 0x1ef   :  { %952 = vmatprep.subr.mxu1 %v916_v5  ;;  %1756 = vmatprep.subr.msk.mxu0 %vm1930_vm3, %v1164_v4 }
 0x1f0   :  { %953 = vmatpush1.msra.mxu1 %v915_v8  ;;  %1757 = vmatpush1.msk.msra.mxu0 %vm1934_vm4, %v1163_v9 }
 0x1f1   :  { %v1334_v10 = vpop.permute.xlu0 %1333  ;;  %v1072_v11 = vpop.permute.xlu1 %1071  ;;  %1747 = vmatmul.mubr.msk.f32.vlgmr.msra.gmra.mxu1 %vm95_vm1, %v1746_v6  ;;  %1758 = vmatmul.mubr.msk.f32.vlgmr.msra.gmra.mxu0 %vm95_vm1, %v1755_v7 }
 0x1f2   :  { %v1337_v12 = vsel %vm520_vm9, %v1332_v54, %v1334_v10  ;;  %v1338_v13 = vsel %vm520_vm9, %v1334_v10, %v1336_v50  ;;  %v1074_v14 = vsel %vm254_vm5, %v1070_v52, %v1072_v11  ;;  %1148 = vmatprep.mubr.f32.mxu1 %v1809_v1  ;;  %1412 = vmatprep.mubr.f32.mxu0 %v1809_v1 }
 0x1f3   :  { %1752 = vmatprep.subr.msk.mxu1 %vm1949_vm6, %v1074_v14  ;;  %1762 = vmatprep.subr.msk.mxu0 %vm1949_vm6, %v1338_v13 }
 0x1f4   :  { %1753 = vmatpush1.msk.msra.mxu1 %vm1958_vm7, %v1073_v16  ;;  %1763 = vmatpush1.msk.msra.mxu0 %vm1958_vm7, %v1337_v12 }
 0x1f5   :  { %v1516_v19 = vpop.permute.xlu0 %1515  ;;  %1282 = vmatprep.subr.mxu1 %v2038_v44  ;;  %v1518_v21 = vpop.permute.xlu1 %1517  ;;  %1754 = vmatmul.mubr.msk.f32.vlgmr.msra.gmra.mxu1 %vm95_vm1, %v1751_v15 }
 0x1f6   :  { %v1519_v22 = vsel %vm704_vm11, %v1514_v61, %v1516_v19  ;;  %1283 = vmatpush1.msra.mxu1 %v2028_v41  ;;  %v1520_v23 = vsel %vm704_vm11, %v1516_v19, %v1518_v21  ;;  %1764 = vmatmul.mubr.msk.f32.vlgmr.msra.gmra.mxu0 %vm95_vm1, %v1761_v18 }
 0x1f7   :  { %1556 = vmatprep.subr.mxu0 %v1520_v23  ;;  %1316 = vmatprep.mubr.f32.mxu1 %v1809_v1 }
 0x1f8   :  { %1557 = vmatpush1.msra.mxu0 %v1519_v22  ;;  %1590 = vmatprep.mubr.f32.mxu0 %v1809_v1 }
 0x1f9   :  { %v1424_v27 = vpop.permute.xlu1 %1423  ;;  %1760 = vmatmul.mubr.msk.f32.vlgmr.msra.gmra.mxu1 %vm95_vm1, %v1759_v25  ;;  %v1604_v32 = vpop.permute.xlu0 %1603 }
 0x1fa   :  { %v1427_v29 = vsel %vm611_vm10, %v1422_v62, %v1424_v27  ;;  %v1428_v30 = vsel %vm611_vm10, %v1424_v27, %v1426_v51  ;;  %1502 = vmatprep.mubr.f32.mxu1 %v1809_v1  ;;  %1770 = vmatmul.mubr.msk.f32.vlgmr.msra.gmra.mxu0 %vm95_vm1, %v1769_v26 }
 0x1fb   :  { %1766 = vmatprep.subr.msk.mxu1 %vm1930_vm3, %v1428_v30 }
 0x1fc   :  { %1767 = vmatpush1.msk.msra.mxu1 %vm1934_vm4, %v1427_v29 }
 0x1fd   :  { %v1602_v33 = vpop.permute.xlu1 %1601  ;;  %1768 = vmatmul.mubr.msk.f32.vlgmr.msra.gmra.mxu1 %vm95_vm1, %v1765_v31 }
 0x1fe   :  { %v1606_v34 = vsel %vm791_vm12, %v1602_v33, %v1604_v32  ;;  %1680 = vmatprep.mubr.f32.mxu1 %v1809_v1 }
 0x1ff   :  { %1772 = vmatprep.subr.msk.mxu1 %vm1949_vm6, %v1606_v34 }
 0x201   :  { %v1600_v35 = vpop.permute.xlu1 %1599 }
 0x202   :  { %v1605_v36 = vsel %vm791_vm12, %v1600_v35, %v1602_v33 }
 0x203   :  { %1773 = vmatpush1.msk.msra.mxu1 %vm1958_vm7, %v1605_v36 }
 0x204   :  { %1774 = vmatmul.mubr.msk.f32.vlgmr.msra.gmra.mxu1 %vm95_vm1, %v1771_v17 }
 0x206   :  { %v1693_v4 = vpop.permute.xlu0 %1692 }
 0x2a9   :  { %v1062_v20 = vpop.f32.mrf.mxu0 }
 0x2ab   :  { %v1064_v37 = vpop.f32.mrf.mxu0 }
 0x2b1   :  { %v988_v38 = vpop.f32.mrf.mxu1  ;;  %v1240_v39 = vpop.f32.mrf.mxu0 }
 0x2b2   :  { %v1063_v1 = vadd.f32 %v1062_v20, %v988_v38 }
 0x2b3   :  { %v990_v40 = vpop.f32.mrf.mxu1  ;;  %v1242_v24 = vpop.f32.mrf.mxu0 }
 0x2b4   :  { %v1065_v41 = vadd.f32 %v1064_v37, %v990_v40 }
 0x2b5   :  { %v1150_v42 = vpop.f32.mrf.mxu1 }
 0x2b6   :  { %v1155_v43 = vadd.f32 %v1150_v42, %v1063_v1  ;;  %v1414_v44 = vpop.f32.mrf.mxu0 }
 0x2b7   :  { %v1152_v45 = vpop.f32.mrf.mxu1 }
 0x2b8   :  { %v1156_v46 = vadd.f32 %v1152_v45, %v1065_v41  ;;  %v1245_v47 = vadd.f32 %v1240_v39, %v1155_v43  ;;  %v1416_v50 = vpop.f32.mrf.mxu0 }
 0x2b9   :  { %v1318_v48 = vpop.f32.mrf.mxu1 }
 0x2ba   :  { %v1246_v49 = vadd.f32 %v1242_v24, %v1156_v46  ;;  %v1323_v28 = vadd.f32 %v1318_v48, %v1245_v47  ;;  %v1592_v56 = vpop.f32.mrf.mxu0 }
 0x2bb   :  { %v1320_v51 = vpop.f32.mrf.mxu1 }
 0x2bc   :  { %v1324_v52 = vadd.f32 %v1320_v51, %v1246_v49  ;;  %v1419_v53 = vadd.f32 %v1414_v44, %v1323_v28  ;;  %v1594_v60 = vpop.f32.mrf.mxu0 }
 0x2bd   :  { %v1504_v54 = vpop.f32.mrf.mxu1 }
 0x2be   :  { %v1420_v55 = vadd.f32 %v1416_v50, %v1324_v52  ;;  %v1509_v57 = vadd.f32 %v1504_v54, %v1419_v53 }
 0x2bf   :  { %v1506_v58 = vpop.f32.mrf.mxu1 }
 0x2c0   :  { %v1510_v59 = vadd.f32 %v1506_v58, %v1420_v55  ;;  %v1597_v61 = vadd.f32 %v1592_v56, %v1509_v57 }
 0x2c2   :  { %v1598_v63 = vadd.f32 %v1594_v60, %v1510_v59 }
 0x2c4   :  { %v1682_v62 = vpop.f32.mrf.mxu1 }
 0x2c5   :  { %v1687_v3 = vadd.f32 %v1682_v62, %v1597_v61 }
 0x2c6   :  { %v1684_v5 = vpop.f32.mrf.mxu1 }
 0x2c7   :  { %v1695_v6 = vadd.f32 %v1693_v4, %v1687_v3  ;;  %v1688_v7 = vadd.f32 %v1684_v5, %v1598_v63 }
 0x2c9   :  { %v1696_v8 = vadd.f32 %v1693_v4, %v1688_v7  ;;  %v1697_v9 = vadd.f32 %v1695_v6, %v1853_v0 }
 0x2cb   :  { %v1698_v10 = vadd.f32 %v1696_v8, %v1862_v2  ;;  %v1699_v11 = vmax.f32 %v1697_v9, 0.0 }
 0x2cd   :  { %v1700_v12 = vmax.f32 %v1698_v10, 0.0  ;;  %1701 = vst [vmem:[#allocation3] sm:$0xff] %v1699_v11 }
 0x2cf   :  { %1702 = vst [vmem:[#allocation3 + $0x8] sm:$0xff] %v1700_v12 }
 0x2d0   :  { %1798 = shalt.err (!%p1795_p4)
}
 0x2d1   :  { %1712 = dma.vmem_to_hbm [thread:$0]  %s1710_s14, 256, %s2166_s5, [#allocation4]  }
 0x2d2   :  { %1807 = dma.done.wait [#allocation4], 256  }
 0x2d3   :  { %1808 = vsyncadd [#allocation4], 4294967040 }
 0x2d4   :  { %1716 = vsyncpa [#allocation4], 1 }

</bundles_post_ra>
